<compile_context>
chip_gen: v7x
topology: tpu7x:2x2x1
jax: 0.10.0
libtpu: 0.0.40
codegen_flags: <defaults>
</compile_context>

<pallas_src>
import functools
import math

import jax
import jax.numpy as jnp
from jax import lax
from jax.experimental import pallas as pl
from jax.experimental.pallas import tpu as pltpu


def _round_up(a, m):
    return (a + m - 1) // m * m


# --------------------------- pass 1: conv + stats --------------------------- #
def _conv3x3_kernel(xa_ref, xb_ref, w_ref, b_ref, mask_ref,
                    y_ref, st_ref, win_ref, rhs_ref, *, tj, wp2):
    """One (batch, spatial-tile) grid step.

    xa_ref, xb_ref: (1, C_in, TJ)    consecutive tiles of the flat padded input
    w_ref:          (C_out, 9*C_in)  fused conv weights (bf16)
    b_ref:          (C_out, 1)       conv bias (f32)
    mask_ref:       (1, TJ)          1.0 on valid output columns, 0.0 on junk
    y_ref:          (1, C_out, TJ)   conv(+bias) output tile (f32)
    st_ref:         (1, 1, C_out, 2) per-tile per-channel [sum, sum_sq]
    win_ref:        (C_in, 2*TJ)     VMEM scratch: tile + halo window
    rhs_ref:        (9*C_in, TJ)     VMEM scratch: fused-K matmul RHS (bf16)
    """
    c_in = xa_ref.shape[1]

    # Stitch the two consecutive tiles: the 3x3 halo (<= 2*(W+2)+2 <= TJ) of
    # tile i lives in tile i+1, so [tile_i | tile_{i+1}] covers every tap.
    win_ref[:, :tj] = xa_ref[0]
    win_ref[:, tj:] = xb_ref[0]

    # Assemble the fused contraction dimension: rows [t*C_in, (t+1)*C_in) hold
    # tap t=(kh,kw), which on the flattened padded-width grid is the *static*
    # lane shift kh*(W+2)+kw of the window.
    for t in range(9):
        kh, kw = divmod(t, 3)
        off = kh * wp2 + kw
        rhs_ref[t * c_in:(t + 1) * c_in, :] = win_ref[:, off:off + tj]

    # Single MXU matmul: bf16 x bf16 -> f32 accumulate.  Write straight into
    # the output block (no big register-carried accumulator).
    acc = jnp.dot(w_ref[...], rhs_ref[...], preferred_element_type=jnp.float32)
    y_ref[0] = (acc + b_ref[...]).astype(y_ref.dtype)

    # Partial GroupNorm statistics for this tile (sum / sum-of-squares form;
    # padded-width junk columns removed by the mask).
    yv = y_ref[0]
    am = yv * mask_ref[...]
    st_ref[0, 0, :, 0:1] = jnp.sum(am, axis=1, keepdims=True)
    st_ref[0, 0, :, 1:2] = jnp.sum(am * yv, axis=1, keepdims=True)


# ----------------------- pass 2: GroupNorm apply ---------------------------- #
def _gn_apply_kernel(y_ref, st_ref, g_ref, bt_ref, o_ref, *,
                     num_groups, cg, inv_cnt, eps):
    """Normalize one (batch, spatial-tile) block with a fused scale/shift.

    y_ref:  (1, C_out, TJ)      conv(+bias) tile
    st_ref: (1, NT, C_out, 2)   all partial stats of this batch element
    g_ref:  (C_out, 1)          GN gamma
    bt_ref: (C_out, 1)          GN beta
    o_ref:  (1, C_out, TJ)      normalized output tile
    """
    c_out = g_ref.shape[0]

    # Combine per-tile partial stats -> per-channel sum / sum-of-squares.
    tot = jnp.sum(st_ref[0], axis=0)              # (C_out, 2)
    cs, css = tot[:, 0:1], tot[:, 1:2]

    # Group reduce / broadcast via iota-built indicator matrices (in-kernel
    # constants: no extra inputs, no DMA).  Tiny once-per-tile matmuls.
    gi = lax.broadcasted_iota(jnp.int32, (num_groups, c_out), 0)
    ci = lax.broadcasted_iota(jnp.int32, (num_groups, c_out), 1)
    gmat = ((ci >= gi * cg) & (ci < gi * cg + cg)).astype(jnp.float32)
    mean_g = jnp.dot(gmat, cs, preferred_element_type=jnp.float32) * inv_cnt
    ex2_g = jnp.dot(gmat, css, preferred_element_type=jnp.float32) * inv_cnt
    inv_g = lax.rsqrt(ex2_g - mean_g * mean_g + eps)          # (G, 1)

    ci2 = lax.broadcasted_iota(jnp.int32, (c_out, num_groups), 0)
    gi2 = lax.broadcasted_iota(jnp.int32, (c_out, num_groups), 1)
    gmat_t = ((ci2 >= gi2 * cg) & (ci2 < gi2 * cg + cg)).astype(jnp.float32)
    mean_c = jnp.dot(gmat_t, mean_g, preferred_element_type=jnp.float32)
    inv_c = jnp.dot(gmat_t, inv_g, preferred_element_type=jnp.float32)

    # Fused affine: y_norm = conv * scale + shift.
    scale = inv_c * g_ref[...]
    shift = bt_ref[...] - mean_c * scale
    o_ref[0] = (y_ref[0] * scale + shift).astype(o_ref.dtype)


# --------------------------------- wrapper ---------------------------------- #
def conv3x3_norm(x, weight, bias, gamma, beta, *, num_groups, eps=1e-5,
                 tile_j=512):
    """x: (N, C_in, H, W) f32 -> (N, C_out, H, W) f32.

    Conv2d(3x3, stride=1, padding=1, groups=1) followed by GroupNorm.
    """
    n, c_in, h, w = x.shape
    c_out = weight.shape[0]
    assert c_out % num_groups == 0
    cg = c_out // num_groups
    wp2 = w + 2

    # bf16 sublane packing: keep the fused-K blocks 16-row aligned.
    c_in_p = _round_up(c_in, 16)

    # Flat "padded-width" output grid: outputs live at j = h*(W+2) + w, w < W.
    j_valid = h * wp2
    tj = min(tile_j, _round_up(j_valid, 128))
    tj = max(_round_up(tj, 128), _round_up(2 * wp2 + 2, 128))   # halo fits in one tile
    nt = pl.cdiv(j_valid, tj)
    l_out = nt * tj
    l_in = (nt + 1) * tj          # one extra tile so block i+1 (halo) always exists

    # --- glue: channel pad, spatial zero-pad, flatten, flat-tail pad, bf16 ---
    x_p = jnp.pad(x, ((0, 0), (0, c_in_p - c_in), (0, 0), (0, 0)))
    xp = jnp.pad(x_p, ((0, 0), (0, 0), (1, 1), (1, 1)))
    xf = xp.reshape(n, c_in_p, (h + 2) * wp2)
    xf = jnp.pad(xf, ((0, 0), (0, 0), (0, l_in - (h + 2) * wp2)))
    xf = xf.astype(jnp.bfloat16)

    # (C_out, C_in, 3, 3) -> (C_out, 9*C_in_p); column t*C_in_p + ci <=> tap t.
    w_p = jnp.pad(weight, ((0, 0), (0, c_in_p - c_in), (0, 0), (0, 0)))
    w_f = jnp.transpose(w_p, (0, 2, 3, 1)).reshape(c_out, 9 * c_in_p)
    w_f = w_f.astype(jnp.bfloat16)

    # Validity mask on the flat padded-width grid (junk columns + tile tail).
    jj = jnp.arange(l_out)
    mask = (((jj % wp2) < w) & (jj < j_valid)).astype(jnp.float32)
    mask = mask.reshape(1, l_out)

    b2 = bias.reshape(c_out, 1).astype(jnp.float32)
    g2 = gamma.reshape(c_out, 1).astype(jnp.float32)
    bt2 = beta.reshape(c_out, 1).astype(jnp.float32)

    cparams = pltpu.CompilerParams(
        dimension_semantics=("parallel", "parallel"),
        vmem_limit_bytes=48 * 1024 * 1024)

    # ---- pass 1: conv (+bias) tiles and per-tile partial GN statistics ----
    y_flat, stats = pl.pallas_call(
        functools.partial(_conv3x3_kernel, tj=tj, wp2=wp2),
        out_shape=(jax.ShapeDtypeStruct((n, c_out, l_out), jnp.float32),
                   jax.ShapeDtypeStruct((n, nt, c_out, 2), jnp.float32)),
        grid_spec=pltpu.PrefetchScalarGridSpec(
            num_scalar_prefetch=0,
            grid=(n, nt),
            in_specs=[
                pl.BlockSpec((1, c_in_p, tj), lambda b, i: (b, 0, i)),       # tile
                pl.BlockSpec((1, c_in_p, tj), lambda b, i: (b, 0, i + 1)),   # halo
                pl.BlockSpec((c_out, 9 * c_in_p), lambda b, i: (0, 0)),
                pl.BlockSpec((c_out, 1), lambda b, i: (0, 0)),
                pl.BlockSpec((1, tj), lambda b, i: (0, i)),
            ],
            out_specs=(
                pl.BlockSpec((1, c_out, tj), lambda b, i: (b, 0, i)),
                pl.BlockSpec((1, 1, c_out, 2), lambda b, i: (b, i, 0, 0)),
            ),
            scratch_shapes=[
                pltpu.VMEM((c_in_p, 2 * tj), jnp.bfloat16),      # window
                pltpu.VMEM((9 * c_in_p, tj), jnp.bfloat16),      # fused-K RHS
            ],
        ),
        compiler_params=cparams,
    )(xf, xf, w_f, b2, mask)

    # ---- pass 2: combine stats, normalize + fused affine ----
    y_norm = pl.pallas_call(
        functools.partial(_gn_apply_kernel, num_groups=num_groups, cg=cg,
                          inv_cnt=1.0 / float(cg * h * w), eps=float(eps)),
        out_shape=jax.ShapeDtypeStruct((n, c_out, l_out), x.dtype),
        grid_spec=pltpu.PrefetchScalarGridSpec(
            num_scalar_prefetch=0,
            grid=(n, nt),
            in_specs=[
                pl.BlockSpec((1, c_out, tj), lambda b, i: (b, 0, i)),
                pl.BlockSpec((1, nt, c_out, 2), lambda b, i: (b, 0, 0, 0)),
                pl.BlockSpec((c_out, 1), lambda b, i: (0, 0)),
                pl.BlockSpec((c_out, 1), lambda b, i: (0, 0)),
            ],
            out_specs=pl.BlockSpec((1, c_out, tj), lambda b, i: (b, 0, i)),
        ),
        compiler_params=cparams,
    )(y_flat, stats, g2, bt2)

    # Strip padded-width junk columns and the flat tile-padding tail.
    out = y_norm[:, :, :j_valid].reshape(n, c_out, h, wp2)[:, :, :, :w]
    return out


# ------------------------------- reference ---------------------------------- #
def _reference(x, weight, bias, gamma, beta, num_groups, eps=1e-5):
    """Pure-JAX reference: Conv2d(3x3, s=1, p=1) + GroupNorm."""
    y = lax.conv_general_dilated(
        x, weight, window_strides=(1, 1), padding=((1, 1), (1, 1)),
        dimension_numbers=("NCHW", "OIHW", "NCHW"))
    y = y + bias[None, :, None, None]
    n, c, h, w = y.shape
    g = y.reshape(n, num_groups, -1)
    mean = g.mean(axis=2, keepdims=True)
    var = ((g - mean) ** 2).mean(axis=2, keepdims=True)
    g = (g - mean) / jnp.sqrt(var + eps)
    y = g.reshape(n, c, h, w)
    return y * gamma[None, :, None, None] + beta[None, :, None, None]


if __name__ == "__main__":
    key = jax.random.PRNGKey(0)
    k1, k2, k3, k4, k5 = jax.random.split(key, 5)

    N, C_IN, C_OUT, H, W = 2, 4, 8, 16, 16
    GN_GROUPS = 4

    x = jax.random.normal(k1, (N, C_IN, H, W), jnp.float32)
    fan_in = C_IN * 3 * 3
    weight = jax.random.normal(k2, (C_OUT, C_IN, 3, 3), jnp.float32) / math.sqrt(fan_in)
    bias = 0.1 * jax.random.normal(k3, (C_OUT,), jnp.float32)
    gamma = 1.0 + 0.1 * jax.random.normal(k4, (C_OUT,), jnp.float32)
    beta = 0.1 * jax.random.normal(k5, (C_OUT,), jnp.float32)

    fn = jax.jit(functools.partial(conv3x3_norm, num_groups=GN_GROUPS))
    out = jax.block_until_ready(fn(x, weight, bias, gamma, beta))
    assert out.shape == (N, C_OUT, H, W)

    # Tight check vs. a reference fed the same bf16-rounded MXU operands
    # (isolates kernel correctness from the intentional bf16 input cast).
    x_bf = x.astype(jnp.bfloat16).astype(jnp.float32)
    w_bf = weight.astype(jnp.bfloat16).astype(jnp.float32)
    ref_bf = _reference(x_bf, w_bf, bias, gamma, beta, GN_GROUPS)
    assert jnp.allclose(out, ref_bf, atol=2e-3, rtol=2e-3)

    # Loose check vs. the full-f32 reference (drift bounded by bf16 inputs).
    ref_f32 = _reference(x, weight, bias, gamma, beta, GN_GROUPS)
    assert jnp.allclose(out, ref_f32, atol=1e-1, rtol=1e-1)

    print("KERNEL_OK")
</pallas_src>

<mosaic_0001>
module attributes {stable_mosaic.version = 11 : i64} {
  func.func @_gn_apply_kernel(%arg0: i32, %arg1: i32, %arg2: memref<1x8x384xf32, #tpu.memory_space<vmem>>, %arg3: memref<1x1x8x2xf32, #tpu.memory_space<vmem>>, %arg4: memref<8x1xf32, #tpu.memory_space<vmem>>, %arg5: memref<8x1xf32, #tpu.memory_space<vmem>>, %arg6: memref<1x8x384xf32, #tpu.memory_space<vmem>>) attributes {dimension_semantics = [#tpu.dimension_semantics<parallel>, #tpu.dimension_semantics<parallel>], iteration_bounds = array<i64: 2, 1>, scalar_prefetch = 0 : i64, scratch_operands = 0 : i64, tpu.core_type = #tpu.core_type<tc>, window_params = [{transform_indices = @transform_0, window_bounds = array<i64: 1, 8, 384>}, {transform_indices = @transform_1, window_bounds = array<i64: 1, 1, 8, 2>}, {pipeline_mode = #tpu.pipeline_mode<synchronous>, transform_indices = @transform_2, window_bounds = array<i64: 8, 1>}, {pipeline_mode = #tpu.pipeline_mode<synchronous>, transform_indices = @transform_3, window_bounds = array<i64: 8, 1>}, {transform_indices = @transform_4, window_bounds = array<i64: 1, 8, 384>}]} {
    %c0 = arith.constant 0 : index
    %c0_0 = arith.constant 0 : index
    %c0_1 = arith.constant 0 : index
    %c0_2 = arith.constant 0 : index
    %0 = vector.load %arg3[%c0, %c0_0, %c0_1, %c0_2] : memref<1x1x8x2xf32, #tpu.memory_space<vmem>>, vector<1x1x8x2xf32>
    %1 = vector.shape_cast %0 : vector<1x1x8x2xf32> to vector<1x8x2xf32>
    %cst = arith.constant dense<0.000000e+00> : vector<8x2xf32>
    %2 = vector.multi_reduction <add>, %1, %cst [0] : vector<1x8x2xf32> to vector<8x2xf32>
    %3 = vector.extract_strided_slice %2 {offsets = [0, 0], sizes = [8, 1], strides = [1, 1]} : vector<8x2xf32> to vector<8x1xf32>
    %4 = vector.extract_strided_slice %2 {offsets = [0, 1], sizes = [8, 1], strides = [1, 1]} : vector<8x2xf32> to vector<8x1xf32>
    %5 = tpu.iota {dimensions = array<i32: 0>} : vector<4x8xi32>
    %6 = tpu.iota {dimensions = array<i32: 1>} : vector<4x8xi32>
    %c2_i32 = arith.constant 2 : i32
    %7 = vector.broadcast %c2_i32 : i32 to vector<4x8xi32>
    %8 = arith.muli %5, %7 : vector<4x8xi32>
    %9 = arith.cmpi sge, %6, %8 : vector<4x8xi32>
    %c2_i32_3 = arith.constant 2 : i32
    %10 = vector.broadcast %c2_i32_3 : i32 to vector<4x8xi32>
    %11 = arith.muli %5, %10 : vector<4x8xi32>
    %c2_i32_4 = arith.constant 2 : i32
    %12 = vector.broadcast %c2_i32_4 : i32 to vector<4x8xi32>
    %13 = arith.addi %11, %12 : vector<4x8xi32>
    %14 = arith.cmpi slt, %6, %13 : vector<4x8xi32>
    %15 = arith.andi %9, %14 : vector<4x8xi1>
    %16 = arith.extui %15 : vector<4x8xi1> to vector<4x8xi32>
    %17 = arith.sitofp %16 : vector<4x8xi32> to vector<4x8xf32>
    %cst_5 = arith.constant dense<0.000000e+00> : vector<4x1xf32>
    %18 = tpu.matmul %17, %3, %cst_5 {dimension_numbers = #tpu.dot_dimension_numbers<[1], [0], [0], [1], [0, 0, 1, 1], [], []>} : vector<4x8xf32>, vector<8x1xf32>, vector<4x1xf32> -> vector<4x1xf32>
    %cst_6 = arith.constant 0.001953125 : f32
    %19 = vector.broadcast %cst_6 : f32 to vector<4x1xf32>
    %20 = arith.mulf %18, %19 : vector<4x1xf32>
    %cst_7 = arith.constant dense<0.000000e+00> : vector<4x1xf32>
    %21 = tpu.matmul %17, %4, %cst_7 {dimension_numbers = #tpu.dot_dimension_numbers<[1], [0], [0], [1], [0, 0, 1, 1], [], []>} : vector<4x8xf32>, vector<8x1xf32>, vector<4x1xf32> -> vector<4x1xf32>
    %cst_8 = arith.constant 0.001953125 : f32
    %22 = vector.broadcast %cst_8 : f32 to vector<4x1xf32>
    %23 = arith.mulf %21, %22 : vector<4x1xf32>
    %24 = arith.mulf %20, %20 : vector<4x1xf32>
    %25 = arith.subf %23, %24 : vector<4x1xf32>
    %cst_9 = arith.constant 9.99999974E-6 : f32
    %26 = vector.broadcast %cst_9 : f32 to vector<4x1xf32>
    %27 = arith.addf %25, %26 : vector<4x1xf32>
    %28 = math.rsqrt %27 : vector<4x1xf32>
    %29 = tpu.iota {dimensions = array<i32: 0>} : vector<8x4xi32>
    %30 = tpu.iota {dimensions = array<i32: 1>} : vector<8x4xi32>
    %c2_i32_10 = arith.constant 2 : i32
    %31 = vector.broadcast %c2_i32_10 : i32 to vector<8x4xi32>
    %32 = arith.muli %30, %31 : vector<8x4xi32>
    %33 = arith.cmpi sge, %29, %32 : vector<8x4xi32>
    %c2_i32_11 = arith.constant 2 : i32
    %34 = vector.broadcast %c2_i32_11 : i32 to vector<8x4xi32>
    %35 = arith.muli %30, %34 : vector<8x4xi32>
    %c2_i32_12 = arith.constant 2 : i32
    %36 = vector.broadcast %c2_i32_12 : i32 to vector<8x4xi32>
    %37 = arith.addi %35, %36 : vector<8x4xi32>
    %38 = arith.cmpi slt, %29, %37 : vector<8x4xi32>
    %39 = arith.andi %33, %38 : vector<8x4xi1>
    %40 = arith.extui %39 : vector<8x4xi1> to vector<8x4xi32>
    %41 = arith.sitofp %40 : vector<8x4xi32> to vector<8x4xf32>
    %cst_13 = arith.constant dense<0.000000e+00> : vector<8x1xf32>
    %42 = tpu.matmul %41, %20, %cst_13 {dimension_numbers = #tpu.dot_dimension_numbers<[1], [0], [0], [1], [0, 0, 1, 1], [], []>} : vector<8x4xf32>, vector<4x1xf32>, vector<8x1xf32> -> vector<8x1xf32>
    %cst_14 = arith.constant dense<0.000000e+00> : vector<8x1xf32>
    %43 = tpu.matmul %41, %28, %cst_14 {dimension_numbers = #tpu.dot_dimension_numbers<[1], [0], [0], [1], [0, 0, 1, 1], [], []>} : vector<8x4xf32>, vector<4x1xf32>, vector<8x1xf32> -> vector<8x1xf32>
    %c0_15 = arith.constant 0 : index
    %c0_16 = arith.constant 0 : index
    %44 = vector.load %arg4[%c0_15, %c0_16] : memref<8x1xf32, #tpu.memory_space<vmem>>, vector<8x1xf32>
    %45 = arith.mulf %43, %44 : vector<8x1xf32>
    %c0_17 = arith.constant 0 : index
    %c0_18 = arith.constant 0 : index
    %46 = vector.load %arg5[%c0_17, %c0_18] : memref<8x1xf32, #tpu.memory_space<vmem>>, vector<8x1xf32>
    %47 = arith.mulf %42, %45 : vector<8x1xf32>
    %48 = arith.subf %46, %47 : vector<8x1xf32>
    %c0_19 = arith.constant 0 : index
    %c0_20 = arith.constant 0 : index
    %c0_21 = arith.constant 0 : index
    %49 = vector.load %arg2[%c0_19, %c0_20, %c0_21] : memref<1x8x384xf32, #tpu.memory_space<vmem>>, vector<1x8x384xf32>
    %50 = vector.shape_cast %49 : vector<1x8x384xf32> to vector<8x384xf32>
    %51 = vector.broadcast %45 : vector<8x1xf32> to vector<8x384xf32>
    %52 = arith.mulf %50, %51 : vector<8x384xf32>
    %53 = vector.broadcast %48 : vector<8x1xf32> to vector<8x384xf32>
    %54 = arith.addf %52, %53 : vector<8x384xf32>
    %c0_22 = arith.constant 0 : index
    %c0_23 = arith.constant 0 : index
    %c0_24 = arith.constant 0 : index
    %55 = vector.load %arg6[%c0_22, %c0_23, %c0_24] : memref<1x8x384xf32, #tpu.memory_space<vmem>>, vector<1x8x384xf32>
    %56 = vector.shape_cast %55 : vector<1x8x384xf32> to vector<8x384xf32>
    %57 = vector.shape_cast %54 : vector<8x384xf32> to vector<1x8x384xf32>
    tpu.vector_store %arg6[%c0_22, %c0_23, %c0_24], %57 {strides = array<i32>} : memref<1x8x384xf32, #tpu.memory_space<vmem>>, vector<1x8x384xf32>,
    return
  }
  func.func @transform_0(%arg0: i32, %arg1: i32) -> (i32, i32, i32) {
    %c0_i32 = arith.constant 0 : i32
    %c0_i32_0 = arith.constant 0 : i32
    return %arg0, %c0_i32, %arg1 : i32, i32, i32
  }
  func.func @transform_1(%arg0: i32, %arg1: i32) -> (i32, i32, i32, i32) {
    %c0_i32 = arith.constant 0 : i32
    %c0_i32_0 = arith.constant 0 : i32
    %c0_i32_1 = arith.constant 0 : i32
    %c0_i32_2 = arith.constant 0 : i32
    return %arg0, %c0_i32, %c0_i32_0, %c0_i32_1 : i32, i32, i32, i32
  }
  func.func @transform_2(%arg0: i32, %arg1: i32) -> (i32, i32) {
    %c0_i32 = arith.constant 0 : i32
    %c0_i32_0 = arith.constant 0 : i32
    %c0_i32_1 = arith.constant 0 : i32
    return %c0_i32, %c0_i32_0 : i32, i32
  }
  func.func @transform_3(%arg0: i32, %arg1: i32) -> (i32, i32) {
    %c0_i32 = arith.constant 0 : i32
    %c0_i32_0 = arith.constant 0 : i32
    %c0_i32_1 = arith.constant 0 : i32
    return %c0_i32, %c0_i32_0 : i32, i32
  }
  func.func @transform_4(%arg0: i32, %arg1: i32) -> (i32, i32, i32) {
    %c0_i32 = arith.constant 0 : i32
    %c0_i32_0 = arith.constant 0 : i32
    return %arg0, %c0_i32, %arg1 : i32, i32, i32
  }
}

module attributes {stable_mosaic.version = 11 : i64} {
  func.func @_conv3x3_kernel(%arg0: i32, %arg1: i32, %arg2: memref<1x16x384xbf16, #tpu.memory_space<vmem>>, %arg3: memref<1x16x384xbf16, #tpu.memory_space<vmem>>, %arg4: memref<8x144xbf16, #tpu.memory_space<vmem>>, %arg5: memref<8x1xf32, #tpu.memory_space<vmem>>, %arg6: memref<1x384xf32, #tpu.memory_space<vmem>>, %arg7: memref<1x8x384xf32, #tpu.memory_space<vmem>>, %arg8: memref<1x1x8x2xf32, #tpu.memory_space<vmem>>, %arg9: memref<16x768xbf16, #tpu.memory_space<vmem>>, %arg10: memref<144x384xbf16, #tpu.memory_space<vmem>>) attributes {dimension_semantics = [#tpu.dimension_semantics<parallel>, #tpu.dimension_semantics<parallel>], iteration_bounds = array<i64: 2, 1>, scalar_prefetch = 0 : i64, scratch_operands = 2 : i64, tpu.core_type = #tpu.core_type<tc>, window_params = [{transform_indices = @transform_0, window_bounds = array<i64: 1, 16, 384>}, {transform_indices = @transform_1, window_bounds = array<i64: 1, 16, 384>}, {pipeline_mode = #tpu.pipeline_mode<synchronous>, transform_indices = @transform_2, window_bounds = array<i64: 8, 144>}, {pipeline_mode = #tpu.pipeline_mode<synchronous>, transform_indices = @transform_3, window_bounds = array<i64: 8, 1>}, {transform_indices = @transform_4, window_bounds = array<i64: 1, 384>}, {transform_indices = @transform_5, window_bounds = array<i64: 1, 8, 384>}, {transform_indices = @transform_6, window_bounds = array<i64: 1, 1, 8, 2>}]} {
    %c0 = arith.constant 0 : index
    %c0_0 = arith.constant 0 : index
    %c0_1 = arith.constant 0 : index
    %0 = vector.load %arg2[%c0, %c0_0, %c0_1] : memref<1x16x384xbf16, #tpu.memory_space<vmem>>, vector<1x16x384xbf16>
    %1 = vector.shape_cast %0 : vector<1x16x384xbf16> to vector<16x384xbf16>
    %c0_2 = arith.constant 0 : index
    %c0_3 = arith.constant 0 : index
    %2 = vector.load %arg9[%c0_2, %c0_3] : memref<16x768xbf16, #tpu.memory_space<vmem>>, vector<16x384xbf16>
    tpu.vector_store %arg9[%c0_2, %c0_3], %1 {strides = array<i32>} : memref<16x768xbf16, #tpu.memory_space<vmem>>, vector<16x384xbf16>,
    %c0_4 = arith.constant 0 : index
    %c0_5 = arith.constant 0 : index
    %c0_6 = arith.constant 0 : index
    %3 = vector.load %arg3[%c0_4, %c0_5, %c0_6] : memref<1x16x384xbf16, #tpu.memory_space<vmem>>, vector<1x16x384xbf16>
    %4 = vector.shape_cast %3 : vector<1x16x384xbf16> to vector<16x384xbf16>
    %c0_7 = arith.constant 0 : index
    %c384 = arith.constant 384 : index
    %5 = vector.load %arg9[%c0_7, %c384] : memref<16x768xbf16, #tpu.memory_space<vmem>>, vector<16x384xbf16>
    tpu.vector_store %arg9[%c0_7, %c384], %4 {strides = array<i32>} : memref<16x768xbf16, #tpu.memory_space<vmem>>, vector<16x384xbf16>,
    %c0_8 = arith.constant 0 : index
    %c0_9 = arith.constant 0 : index
    %6 = vector.load %arg9[%c0_8, %c0_9] : memref<16x768xbf16, #tpu.memory_space<vmem>>, vector<16x384xbf16>
    %c0_10 = arith.constant 0 : index
    %c0_11 = arith.constant 0 : index
    %7 = vector.load %arg10[%c0_10, %c0_11] : memref<144x384xbf16, #tpu.memory_space<vmem>>, vector<16x384xbf16>
    tpu.vector_store %arg10[%c0_10, %c0_11], %6 {strides = array<i32>} : memref<144x384xbf16, #tpu.memory_space<vmem>>, vector<16x384xbf16>,
    %c0_12 = arith.constant 0 : index
    %c1 = arith.constant 1 : index
    %8 = vector.load %arg9[%c0_12, %c1] : memref<16x768xbf16, #tpu.memory_space<vmem>>, vector<16x384xbf16>
    %c16 = arith.constant 16 : index
    %c0_13 = arith.constant 0 : index
    %9 = vector.load %arg10[%c16, %c0_13] : memref<144x384xbf16, #tpu.memory_space<vmem>>, vector<16x384xbf16>
    tpu.vector_store %arg10[%c16, %c0_13], %8 {strides = array<i32>} : memref<144x384xbf16, #tpu.memory_space<vmem>>, vector<16x384xbf16>,
    %c0_14 = arith.constant 0 : index
    %c2 = arith.constant 2 : index
    %10 = vector.load %arg9[%c0_14, %c2] : memref<16x768xbf16, #tpu.memory_space<vmem>>, vector<16x384xbf16>
    %c32 = arith.constant 32 : index
    %c0_15 = arith.constant 0 : index
    %11 = vector.load %arg10[%c32, %c0_15] : memref<144x384xbf16, #tpu.memory_space<vmem>>, vector<16x384xbf16>
    tpu.vector_store %arg10[%c32, %c0_15], %10 {strides = array<i32>} : memref<144x384xbf16, #tpu.memory_space<vmem>>, vector<16x384xbf16>,
    %c0_16 = arith.constant 0 : index
    %c18 = arith.constant 18 : index
    %12 = vector.load %arg9[%c0_16, %c18] : memref<16x768xbf16, #tpu.memory_space<vmem>>, vector<16x384xbf16>
    %c48 = arith.constant 48 : index
    %c0_17 = arith.constant 0 : index
    %13 = vector.load %arg10[%c48, %c0_17] : memref<144x384xbf16, #tpu.memory_space<vmem>>, vector<16x384xbf16>
    tpu.vector_store %arg10[%c48, %c0_17], %12 {strides = array<i32>} : memref<144x384xbf16, #tpu.memory_space<vmem>>, vector<16x384xbf16>,
    %c0_18 = arith.constant 0 : index
    %c19 = arith.constant 19 : index
    %14 = vector.load %arg9[%c0_18, %c19] : memref<16x768xbf16, #tpu.memory_space<vmem>>, vector<16x384xbf16>
    %c64 = arith.constant 64 : index
    %c0_19 = arith.constant 0 : index
    %15 = vector.load %arg10[%c64, %c0_19] : memref<144x384xbf16, #tpu.memory_space<vmem>>, vector<16x384xbf16>
    tpu.vector_store %arg10[%c64, %c0_19], %14 {strides = array<i32>} : memref<144x384xbf16, #tpu.memory_space<vmem>>, vector<16x384xbf16>,
    %c0_20 = arith.constant 0 : index
    %c20 = arith.constant 20 : index
    %16 = vector.load %arg9[%c0_20, %c20] : memref<16x768xbf16, #tpu.memory_space<vmem>>, vector<16x384xbf16>
    %c80 = arith.constant 80 : index
    %c0_21 = arith.constant 0 : index
    %17 = vector.load %arg10[%c80, %c0_21] : memref<144x384xbf16, #tpu.memory_space<vmem>>, vector<16x384xbf16>
    tpu.vector_store %arg10[%c80, %c0_21], %16 {strides = array<i32>} : memref<144x384xbf16, #tpu.memory_space<vmem>>, vector<16x384xbf16>,
    %c0_22 = arith.constant 0 : index
    %c36 = arith.constant 36 : index
    %18 = vector.load %arg9[%c0_22, %c36] : memref<16x768xbf16, #tpu.memory_space<vmem>>, vector<16x384xbf16>
    %c96 = arith.constant 96 : index
    %c0_23 = arith.constant 0 : index
    %19 = vector.load %arg10[%c96, %c0_23] : memref<144x384xbf16, #tpu.memory_space<vmem>>, vector<16x384xbf16>
    tpu.vector_store %arg10[%c96, %c0_23], %18 {strides = array<i32>} : memref<144x384xbf16, #tpu.memory_space<vmem>>, vector<16x384xbf16>,
    %c0_24 = arith.constant 0 : index
    %c37 = arith.constant 37 : index
    %20 = vector.load %arg9[%c0_24, %c37] : memref<16x768xbf16, #tpu.memory_space<vmem>>, vector<16x384xbf16>
    %c112 = arith.constant 112 : index
    %c0_25 = arith.constant 0 : index
    %21 = vector.load %arg10[%c112, %c0_25] : memref<144x384xbf16, #tpu.memory_space<vmem>>, vector<16x384xbf16>
    tpu.vector_store %arg10[%c112, %c0_25], %20 {strides = array<i32>} : memref<144x384xbf16, #tpu.memory_space<vmem>>, vector<16x384xbf16>,
    %c0_26 = arith.constant 0 : index
    %c38 = arith.constant 38 : index
    %22 = vector.load %arg9[%c0_26, %c38] : memref<16x768xbf16, #tpu.memory_space<vmem>>, vector<16x384xbf16>
    %c128 = arith.constant 128 : index
    %c0_27 = arith.constant 0 : index
    %23 = vector.load %arg10[%c128, %c0_27] : memref<144x384xbf16, #tpu.memory_space<vmem>>, vector<16x384xbf16>
    tpu.vector_store %arg10[%c128, %c0_27], %22 {strides = array<i32>} : memref<144x384xbf16, #tpu.memory_space<vmem>>, vector<16x384xbf16>,
    %c0_28 = arith.constant 0 : index
    %c0_29 = arith.constant 0 : index
    %24 = vector.load %arg4[%c0_28, %c0_29] : memref<8x144xbf16, #tpu.memory_space<vmem>>, vector<8x144xbf16>
    %c0_30 = arith.constant 0 : index
    %c0_31 = arith.constant 0 : index
    %25 = vector.load %arg10[%c0_30, %c0_31] : memref<144x384xbf16, #tpu.memory_space<vmem>>, vector<144x384xbf16>
    %cst = arith.constant dense<0.000000e+00> : vector<8x384xf32>
    %26 = tpu.matmul %24, %25, %cst {dimension_numbers = #tpu.dot_dimension_numbers<[1], [0], [0], [1], [0, 0, 1, 1], [], []>} : vector<8x144xbf16>, vector<144x384xbf16>, vector<8x384xf32> -> vector<8x384xf32>
    %c0_32 = arith.constant 0 : index
    %c0_33 = arith.constant 0 : index
    %27 = vector.load %arg5[%c0_32, %c0_33] : memref<8x1xf32, #tpu.memory_space<vmem>>, vector<8x1xf32>
    %28 = vector.broadcast %27 : vector<8x1xf32> to vector<8x384xf32>
    %29 = arith.addf %26, %28 : vector<8x384xf32>
    %c0_34 = arith.constant 0 : index
    %c0_35 = arith.constant 0 : index
    %c0_36 = arith.constant 0 : index
    %30 = vector.load %arg7[%c0_34, %c0_35, %c0_36] : memref<1x8x384xf32, #tpu.memory_space<vmem>>, vector<1x8x384xf32>
    %31 = vector.shape_cast %30 : vector<1x8x384xf32> to vector<8x384xf32>
    %32 = vector.shape_cast %29 : vector<8x384xf32> to vector<1x8x384xf32>
    tpu.vector_store %arg7[%c0_34, %c0_35, %c0_36], %32 {strides = array<i32>} : memref<1x8x384xf32, #tpu.memory_space<vmem>>, vector<1x8x384xf32>,
    %c0_37 = arith.constant 0 : index
    %c0_38 = arith.constant 0 : index
    %c0_39 = arith.constant 0 : index
    %33 = vector.load %arg7[%c0_37, %c0_38, %c0_39] : memref<1x8x384xf32, #tpu.memory_space<vmem>>, vector<1x8x384xf32>
    %34 = vector.shape_cast %33 : vector<1x8x384xf32> to vector<8x384xf32>
    %c0_40 = arith.constant 0 : index
    %c0_41 = arith.constant 0 : index
    %35 = vector.load %arg6[%c0_40, %c0_41] : memref<1x384xf32, #tpu.memory_space<vmem>>, vector<1x384xf32>
    %36 = vector.broadcast %35 : vector<1x384xf32> to vector<8x384xf32>
    %37 = arith.mulf %34, %36 : vector<8x384xf32>
    %cst_42 = arith.constant dense<0.000000e+00> : vector<8xf32>
    %38 = vector.multi_reduction <add>, %37, %cst_42 [1] : vector<8x384xf32> to vector<8xf32>
    %39 = vector.shape_cast %38 : vector<8xf32> to vector<8x1xf32>
    %c0_43 = arith.constant 0 : index
    %c0_44 = arith.constant 0 : index
    %c0_45 = arith.constant 0 : index
    %c0_46 = arith.constant 0 : index
    %40 = vector.load %arg8[%c0_43, %c0_44, %c0_45, %c0_46] : memref<1x1x8x2xf32, #tpu.memory_space<vmem>>, vector<1x1x8x1xf32>
    %41 = vector.shape_cast %40 : vector<1x1x8x1xf32> to vector<8x1xf32>
    %42 = vector.shape_cast %39 : vector<8x1xf32> to vector<1x1x8x1xf32>
    tpu.vector_store %arg8[%c0_43, %c0_44, %c0_45, %c0_46], %42 {strides = array<i32>} : memref<1x1x8x2xf32, #tpu.memory_space<vmem>>, vector<1x1x8x1xf32>,
    %43 = arith.mulf %37, %34 : vector<8x384xf32>
    %cst_47 = arith.constant dense<0.000000e+00> : vector<8xf32>
    %44 = vector.multi_reduction <add>, %43, %cst_47 [1] : vector<8x384xf32> to vector<8xf32>
    %45 = vector.shape_cast %44 : vector<8xf32> to vector<8x1xf32>
    %c0_48 = arith.constant 0 : index
    %c0_49 = arith.constant 0 : index
    %c0_50 = arith.constant 0 : index
    %c1_51 = arith.constant 1 : index
    %46 = vector.load %arg8[%c0_48, %c0_49, %c0_50, %c1_51] : memref<1x1x8x2xf32, #tpu.memory_space<vmem>>, vector<1x1x8x1xf32>
    %47 = vector.shape_cast %46 : vector<1x1x8x1xf32> to vector<8x1xf32>
    %48 = vector.shape_cast %45 : vector<8x1xf32> to vector<1x1x8x1xf32>
    tpu.vector_store %arg8[%c0_48, %c0_49, %c0_50, %c1_51], %48 {strides = array<i32>} : memref<1x1x8x2xf32, #tpu.memory_space<vmem>>, vector<1x1x8x1xf32>,
    return
  }
  func.func @transform_0(%arg0: i32, %arg1: i32) -> (i32, i32, i32) {
    %c0_i32 = arith.constant 0 : i32
    %c0_i32_0 = arith.constant 0 : i32
    return %arg0, %c0_i32, %arg1 : i32, i32, i32
  }
  func.func @transform_1(%arg0: i32, %arg1: i32) -> (i32, i32, i32) {
    %c1_i32 = arith.constant 1 : i32
    %0 = arith.addi %arg1, %c1_i32 : i32
    %c0_i32 = arith.constant 0 : i32
    %c0_i32_0 = arith.constant 0 : i32
    return %arg0, %c0_i32, %0 : i32, i32, i32
  }
  func.func @transform_2(%arg0: i32, %arg1: i32) -> (i32, i32) {
    %c0_i32 = arith.constant 0 : i32
    %c0_i32_0 = arith.constant 0 : i32
    %c0_i32_1 = arith.constant 0 : i32
    return %c0_i32, %c0_i32_0 : i32, i32
  }
  func.func @transform_3(%arg0: i32, %arg1: i32) -> (i32, i32) {
    %c0_i32 = arith.constant 0 : i32
    %c0_i32_0 = arith.constant 0 : i32
    %c0_i32_1 = arith.constant 0 : i32
    return %c0_i32, %c0_i32_0 : i32, i32
  }
  func.func @transform_4(%arg0: i32, %arg1: i32) -> (i32, i32) {
    %c0_i32 = arith.constant 0 : i32
    %c0_i32_0 = arith.constant 0 : i32
    return %c0_i32, %arg1 : i32, i32
  }
  func.func @transform_5(%arg0: i32, %arg1: i32) -> (i32, i32, i32) {
    %c0_i32 = arith.constant 0 : i32
    %c0_i32_0 = arith.constant 0 : i32
    return %arg0, %c0_i32, %arg1 : i32, i32, i32
  }
  func.func @transform_6(%arg0: i32, %arg1: i32) -> (i32, i32, i32, i32) {
    %c0_i32 = arith.constant 0 : i32
    %c0_i32_0 = arith.constant 0 : i32
    %c0_i32_1 = arith.constant 0 : i32
    return %arg0, %arg1, %c0_i32, %c0_i32_0 : i32, i32, i32, i32
  }
}

</mosaic_0001>

<bundles_post_ra>
// kernel: conv3x3_norm.3
= control target key start
LH: loop header
LB: loop body
LE: loop exit
PB: predicated region body
PF: predicated region fallthrough
CT: control target
= control target key end

     0   :  { %s837_s15 = smov 0   ;;  %s839_s16 = smov 0   ;;  %s889_s0 = inlined_call_operand.vmem [shape: f32[2,8,384], index: 0, kind: input, shape index: {}]   ;;  %s890_s1 = inlined_call_operand.vmem [shape: f32[2,1,8,2], index: 1, kind: input, shape index: {}]   ;;  %s891_s2 = inlined_call_operand.vmem [shape: f32[8,1], index: 2, kind: input, shape index: {}]   ;;  %s892_s3 = inlined_call_operand.vmem [shape: f32[8,1], index: 3, kind: input, shape index: {}]   ;;  %s893_s4 = inlined_call_operand.vmem [shape: f32[2,8,384], index: 4, kind: output, shape index: {}]  }
   0x1   :  { %s841_s17 = smov 0  }
   0x2 LB: > { %s26_s18 = sadd.s32 1, %s802_s16  ;;  %p709_p0 = scmp.ge.s32.totalorder %s806_s17, 1  ;;  %s806_s17 = sphi %s841_s17, %s14_s17   ;;  %s802_s16 = sphi %s839_s16, %s895_s16   ;;  %s798_s15 = sphi %s837_s15, %s894_s15  }
   0x3   : > { %p28_p1 = scmp.ge.s32.totalorder %s26_s18, 2  ;;  %p192_p2 = scmp.lt.s32.totalorder %s806_s17, 3 }
   0x5   : > { %s897_s18 = smov (%p28_p1, %s26_s18), 0  ;;  %p193_p3 = pnand %p709_p0, %p192_p2 }
   0x6   : > { %p231_p4 = scmp.lt.s32.totalorder (!%p193_p3), %s798_s15, 1  ;;  %v256_v0 = vlaneseq (!%p193_p3)  ;;  %v808_v1 = vmov (!%p193_p3), 0.0   ;;  %vm809_vm0 = vmmov (!%p193_p3), 0   ;;  %s810_s23 = smov (!%p193_p3), 127   ;;  %vm267_vm3 = vcmask (!%p193_p3), 64512   ;;  %v579_v25 = vld [vmem:[%s891_s2] sm:$0xff] (!%p193_p3) }
   0x7   : > { %196 = sbr.rel (%p193_p3) target bundleno = 714 (0x2ca), region = 36  ;;  %731 = vmatprep.subr.mxu0 (!%p193_p3), %v808_v1  ;;  %733 = vmatprep.mubr.msk.f32.mxu0 (!%p193_p3), %vm809_vm0, %v808_v1  ;;  %vm432_vm5 = vcmask (!%p193_p3), 1043456   ;;  %vm428_vm9 = vcmask (!%p193_p3), 31744   ;;  %v811_v23 = vmov (!%p193_p3), 0   ;;  %v581_v29 = vld [vmem:[%s892_s3] sm:$0xff] (!%p193_p3) }
   0x8   : > { %v257_v2 = vshrl.u32 (!%p193_p3), %v256_v0, 7  ;;  %v259_v3 = vand.u32 (!%p193_p3), 127, %v256_v0  ;;  %736 = vmatprep.subr.mxu1 (!%p193_p3), %v808_v1  ;;  %738 = vmatprep.mubr.msk.f32.mxu1 (!%p193_p3), %vm809_vm0, %v808_v1 }
   0x9   : > { %780 = vset.pattern.permute.xlu0 (!%p193_p3), %v811_v23  ;;  %781 = vset.pattern.permute.xlu1 (!%p193_p3), %v811_v23 }
   0xa   : > { %v260_v4 = vmul.u32 (!%p193_p3), 2, %v257_v2  ;;  %v421_v9 = vmul.u32 (!%p193_p3), 2, %v259_v3 }
   0xc   : > { %vm261_vm1 = vcmp.ge.s32.totalorder (!%p193_p3), %v259_v3, %v260_v4  ;;  %v262_v6 = vadd.s32 (!%p193_p3), 2, %v260_v4  ;;  %v423_v10 = vadd.s32 (!%p193_p3), 2, %v421_v9  ;;  %vm422_vm6 = vcmp.ge.s32.totalorder (!%p193_p3), %v257_v2, %v421_v9 }
   0xe   : > { %s899_s15 = smov (!%p231_p4, %s798_s15), 1  ;;  %vm263_vm2 = vcmp.lt.s32.totalorder %v259_v3, %v262_v6  ;;  %vm424_vm7 = vcmp.lt.s32.totalorder %v257_v2, %v423_v10 }
   0xf   : > { %s711_s19 = sshll.u32 %s899_s15, 3  ;;  %vm264_vm4 = vmand %vm261_vm1, %vm263_vm2  ;;  %s751_s28 = smul.u32 24, %s899_s15 }
  0x10   : > { %s243_s22 = scalar_lea.vmem %s890_s1, %s711_s19  ;;  %v713_v7 = vsel %vm264_vm4, 1.0, %v808_v1  ;;  %vm425_vm8 = vmand %vm422_vm6, %vm424_vm7 }
  0x11   : > { %v254_v5 = vld [vmem:[%s243_s22] sm:$0xff]  ;;  %v716_v14 = vsel %vm425_vm8, 1.0, %v808_v1  ;;  %s238_s5 = scalar_lea.vmem %s889_s0, %s751_s28  ;;  %s252_s8 = scalar_lea.vmem %s893_s4, %s751_s28 }
  0x12   : > { %343 = vrot.lane.b32.xlu0 %v254_v5, %s810_s23  ;;  %732 = vmatpush3.msra.mxu0 %v254_v5  ;;  %v584_v33 = vld [vmem:[%s238_s5] sm:$0xff]  ;;  %v585_v34 = vld [vmem:[%s238_s5 + $0x8] sm:$0xff]  ;;  %v586_v35 = vld [vmem:[%s238_s5 + $0x10] sm:$0xff] }
  0x13   : > { %741 = vmatprep.subr.mxu0 %v808_v1  ;;  %734 = vmatmul.mubr.msk.f32.vlgmr.msra.gmra.mrb[0].mxu0 %vm267_vm3, %v713_v7 }
  0x14   : > { %743 = vmatprep.mubr.msk.f32.mxu0 %vm809_vm0, %v808_v1 }
  0x84   : > { %v344_v8 = vpop.permute.xlu0 %343 }
  0x85   : > { %737 = vmatpush3.msra.mxu1 %v344_v8 }
  0x86   : > { %739 = vmatmul.mubr.msk.f32.vlgmr.msra.gmra.mrb[0].mxu1 %vm267_vm3, %v713_v7  ;;  %746 = vmatprep.subr.mxu1 %v808_v1 }
  0x87   : > { %748 = vmatprep.mubr.msk.f32.mxu1 %vm809_vm0, %v808_v1 }
  0xe6   : > { %v337_v11 = vpop.f32.mrb[0].mxu0 }
  0xe7   : > { %v341_v12 = vmul.f32 0.001953125, %v337_v11  ;;  %v735_v13 = vpop.f32.mrb[1].mxu0 }
  0xe9   : > { %742 = vmatpush3.msk.msra.mxu0 %vm432_vm5, %v341_v12  ;;  %v417_v15 = vmul.f32 %v341_v12, %v341_v12 }
  0xea   : > { %744 = vmatmul.mubr.msk.f32.vlgmr.msra.gmra.mrb[2].mxu0 %vm428_vm9, %v716_v14 }
 0x159   : > { %v412_v16 = vpop.f32.mrb[0].mxu1 }
 0x15a   : > { %v416_v17 = vmul.f32 0.001953125, %v412_v16  ;;  %v740_v18 = vpop.f32.mrb[1].mxu1 }
 0x15c   : > { %v418_v19 = vsub.f32 %v416_v17, %v417_v15 }
 0x15e   : > { %v419_v20 = vadd.f32 1e-05, %v418_v19 }
 0x160   : > { %782 = vrsqrt.f32 %v419_v20 }
 0x16a   : > { %v783_v21 = vpop.eup %782 }
 0x16b   : > { %747 = vmatpush3.msk.msra.mxu1 %vm432_vm5, %v783_v21 }
 0x16c   : > { %749 = vmatmul.mubr.msk.f32.vlgmr.msra.gmra.mrb[2].mxu1 %vm428_vm9, %v716_v14 }
 0x1bd   : > { %v502_v22 = vpop.f32.mrb[2].mxu0 }
 0x1be   : > { %v745_v24 = vpop.f32.mrb[3].mxu0 }
 0x23f   : > { %v575_v26 = vpop.f32.mrb[2].mxu1 }
 0x240   : > { %v580_v27 = vmul.f32 %v579_v25, %v575_v26  ;;  %v750_v28 = vpop.f32.mrb[3].mxu1 }
 0x242   : > { %v582_v30 = vmul.f32 %v580_v27, %v502_v22  ;;  %589 = vperm.xlu0 %780, %v580_v27  }
 0x244   : > { %v583_v31 = vsub.f32 %v581_v29, %v582_v30 }
 0x246   : > { %597 = vperm.xlu1 %781, %v583_v31  }
 0x2c1   : > { %v590_v32 = vpop.permute.xlu0 %589 }
 0x2c2   : > { %v592_v36 = vmul.f32 %v590_v32, %v584_v33  ;;  %v593_v37 = vmul.f32 %v590_v32, %v585_v34  ;;  %v594_v38 = vmul.f32 %v590_v32, %v586_v35 }
 0x2c5   : > { %v598_v39 = vpop.permute.xlu1 %597 }
 0x2c6   : > { %v600_v40 = vadd.f32 %v598_v39, %v592_v36  ;;  %v601_v41 = vadd.f32 %v598_v39, %v593_v37  ;;  %v602_v42 = vadd.f32 %v598_v39, %v594_v38 }
 0x2c8   : > { %603 = vst [vmem:[%s252_s8] sm:$0xff] %v600_v40  ;;  %604 = vst [vmem:[%s252_s8 + $0x8] sm:$0xff] %v601_v41 }
 0x2c9   : > { %605 = vst [vmem:[%s252_s8 + $0x10] sm:$0xff] %v602_v42 }
 0x2ca PF: > { %s14_s17 = sadd.s32 1, %s806_s17   ;;  %s894_s15 = smov %s802_s16 }
 0x2cb   : > { %p11_p5 = scmp.ge.s32.totalorder %s14_s17, 4   ;;  %s895_s16 = smov %s897_s18 }
 0x2cd   :  { %13 = sbr.rel (!%p11_p5) target bundleno = 2 (0x2), region = 69 }

// kernel: conv3x3_norm.2
= control target key start
LH: loop header
LB: loop body
LE: loop exit
PB: predicated region body
PF: predicated region fallthrough
CT: control target
= control target key end

     0   :  { %s1196_s21 = smov 0   ;;  %s1198_s22 = smov 0   ;;  %s1307_s0 = inlined_call_operand.vmem [shape: bf16[2,16,768], index: 0, kind: input, shape index: {}, may-alias: {0,1}]   ;;  %s1308_s1 = inlined_call_operand.vmem [shape: bf16[2,16,768], index: 1, kind: input, shape index: {}, may-alias: {0,1}]   ;;  %s1309_s2 = inlined_call_operand.vmem [shape: bf16[8,144], index: 2, kind: input, shape index: {}]   ;;  %s1310_s3 = inlined_call_operand.vmem [shape: f32[8,1], index: 3, kind: input, shape index: {}]   ;;  %s1311_s4 = inlined_call_operand.vmem [shape: f32[1,384], index: 4, kind: input, shape index: {}]   ;;  %s1312_s5 = inlined_call_operand.vmem [shape: f32[2,8,384], index: 5, kind: output, shape index: {0}]   ;;  %s1313_s6 = inlined_call_operand.vmem [shape: f32[2,1,8,2], index: 6, kind: output, shape index: {1}]  }
   0x1   :  { %s1200_s23 = smov 0   ;;  %s1202_s24 = smov 0  }
   0x2   :  { %s1204_s25 = smov 0  }
   0x3 LB: > { %s29_s26 = sadd.s32 1, %s1146_s24  ;;  %p45_p1 = scmp.ne.s32.totalorder %s1138_s22, %s1134_s21  ;;  %s1150_s25 = sphi %s1204_s25, %s17_s25   ;;  %s1146_s24 = sphi %s1202_s24, %s1318_s24   ;;  %s1142_s23 = sphi %s1200_s23, %s1317_s23   ;;  %s1138_s22 = sphi %s1198_s22, %s1316_s22   ;;  %s1134_s21 = sphi %s1196_s21, %s1315_s21  }
   0x4   : > { %p31_p0 = scmp.ge.s32.totalorder %s29_s26, 2  ;;  %p46_p2 = scmp.eq.s32.totalorder %s1150_s25, 0 }
   0x5   : > { %s38_s29 = sadd.s32 1, %s1138_s22  ;;  %p1022_p5 = scmp.ge.s32.totalorder %s1150_s25, 2 }
   0x6   : > { %s1320_s26 = smov (%p31_p0, %s29_s26), 0  ;;  %p1227_p3 = por %p46_p2, %p45_p1 }
   0x7   : > { %s33_s28 = ssub.s32 %s1146_s24, %s1320_s26  ;;  %239 = sbr.rel (%p1022_p5) target bundleno = 28 (0x1c), region = 28 }
   0x8   : > { %p36_p4 = scmp.eq.s32.totalorder %s33_s28, 0 }
   0xa   : > { %s1235_s30 = scalar_select %p36_p4, %s1138_s22, %s38_s29  }
   0xe   : > { %242 = sbr.rel (!%p1227_p3) target bundleno = 21 (0x15), region = 32  ;;  %s244_s7 = sand.u32 (%p1227_p3), 1, %s1138_s22  }
   0xf   : > { %s1051_s8 = smul.u32 (%p1227_p3), 48, %s1146_s24 }
  0x10   : > { %s1050_s9 = smul.u32 (%p1227_p3), 24, %s244_s7 }
  0x11   : > { %s251_s12 = scalar_lea.vmem (%p1227_p3), %s1307_s0, %s1051_s8 }
  0x12   : > { %v266_v0 = vld [vmem:[%s251_s12] sm:$0xff] (%p1227_p3)  ;;  %v268_v1 = vld [vmem:[%s251_s12 + $0x18] sm:$0xff] (%p1227_p3)  ;;  %v1024_v2 = vld [vmem:[%s251_s12 + $0x8] sm:$0xf] (%p1227_p3)  ;;  %s246_s13 = scalar_lea.vmem (%p1227_p3), [#allocation4], %s1050_s9 }
  0x13   : > { %267 = vst [vmem:[%s246_s13] sm:$0xff] (%p1227_p3), %v266_v0  ;;  %269 = vst [vmem:[%s246_s13 + $0xc] sm:$0xff] (%p1227_p3), %v268_v1  ;;  %v1026_v3 = vld [vmem:[%s251_s12 + $0x20] sm:$0xf] (%p1227_p3) }
  0x14   : > { %1025 = vst [vmem:[%s246_s13 + $0x8] sm:$0xf] (%p1227_p3), %v1024_v2  ;;  %1027 = vst [vmem:[%s246_s13 + $0x14] sm:$0xf] (%p1227_p3), %v1026_v3 }
  0x15 PF: > { %286 = sbr.rel (!%p1227_p3) target bundleno = 28 (0x1c), region = 58  ;;  %s288_s14 = sand.u32 (%p1227_p3), 1, %s1138_s22  }
  0x16   : > { %s1028_s15 = smul.u32 (%p1227_p3), 48, %s1146_s24 }
  0x17   : > { %s1052_s16 = smul.u32 (%p1227_p3), 24, %s288_s14 }
  0x18   : > { %s908_s19 = scalar_lea.vmem (%p1227_p3), %s1308_s1, %s1028_s15 }
  0x19   : > { %v1029_v4 = vld [vmem:[%s908_s19 + $0xc] sm:$0xff] (%p1227_p3)  ;;  %v1030_v5 = vld [vmem:[%s908_s19 + $0x24] sm:$0xff] (%p1227_p3)  ;;  %v1031_v6 = vld [vmem:[%s908_s19 + $0x14] sm:$0xf] (%p1227_p3)  ;;  %s290_s20 = scalar_lea.vmem (%p1227_p3), [#allocation5], %s1052_s16 }
  0x1a   : > { %312 = vst [vmem:[%s290_s20] sm:$0xff] (%p1227_p3), %v1029_v4  ;;  %314 = vst [vmem:[%s290_s20 + $0xc] sm:$0xff] (%p1227_p3), %v1030_v5  ;;  %v1033_v7 = vld [vmem:[%s908_s19 + $0x2c] sm:$0xf] (%p1227_p3) }
  0x1b   : > { %1032 = vst [vmem:[%s290_s20 + $0x8] sm:$0xf] (%p1227_p3), %v1031_v6  ;;  %1034 = vst [vmem:[%s290_s20 + $0x14] sm:$0xf] (%p1227_p3), %v1033_v7 }
  0x1c PF: > { %p1035_p6 = scmp.ge.s32.totalorder %s1150_s25, 1  ;;  %p330_p7 = scmp.lt.s32.totalorder %s1150_s25, 3 }
  0x1e   : > { %p331_p8 = pnand %p1035_p6, %p330_p7 }
  0x1f   : > { %s337_s27 = sand.u32 (!%p331_p8), 1, %s1134_s21   ;;  %v1152_v8 = vmov (!%p331_p8), 0   ;;  %s1153_s7 = smov (!%p331_p8), 127   ;;  %v1261_v13 = vld [vmem:[%s1309_s2] sm:$0xff] (!%p331_p8)  ;;  %vm718_vm0 = vcmask (!%p331_p8), 130048   ;;  %vm486_vm1 = vcmask (!%p331_p8), 1039360  }
  0x20   : > { %334 = sbr.rel (%p331_p8) target bundleno = 582 (0x246), region = 84  ;;  %763 = vmatprep.subr.bf16.mxu1 (!%p331_p8), %v1152_v8  ;;  %1104 = vset.pattern.permute.xlu0 (!%p331_p8), %v1152_v8  ;;  %s1154_s21 = smov (!%p331_p8), 126   ;;  %v1045_v14 = vcombine.high (!%p331_p8), %v1261_v13, %v1261_v13  ;;  %v706_v15 = vld [vmem:[%s1310_s3] sm:$0xff] (!%p331_p8)  ;;  %vm512_vm2 = vcmask (!%p331_p8), 1031168   ;;  %vm538_vm3 = vcmask (!%p331_p8), 900096   ;;  %vm564_vm4 = vcmask (!%p331_p8), 891904  }
  0x21   : > { %s1053_s28 = smul.u32 (!%p331_p8), 24, %s337_s27  ;;  %s1155_s9 = smov (!%p331_p8), 110   ;;  %vm590_vm5 = vcmask (!%p331_p8), 883712   ;;  %vm616_vm6 = vcmask (!%p331_p8), 752640   ;;  %vm642_vm7 = vcmask (!%p331_p8), 744448   ;;  %vm668_vm8 = vcmask (!%p331_p8), 736256  }
  0x22   : > { %s1156_s10 = smov (!%p331_p8), 109   ;;  %s1157_s11 = smov (!%p331_p8), 108   ;;  %1046 = vmatprep.mubr.msk.bf16.mxu0 (!%p331_p8), %vm718_vm0, %v1045_v14  ;;  %1047 = vmatprep.mubr.msk.bf16.mxu1 (!%p331_p8), %vm718_vm0, %v1045_v14  ;;  %v1044_v7 = vcombine.low (!%p331_p8), %v1261_v13, %v1261_v13  ;;  %vm833_vm9 = vcmask (!%p331_p8), 7168   ;;  %vm842_vm10 = vcmask (!%p331_p8), 15368  }
  0x23   : > { %s339_s29 = scalar_lea.vmem (!%p331_p8), [#allocation4], %s1053_s28  ;;  %s346_s8 = scalar_lea.vmem (!%p331_p8), [#allocation5], %s1053_s28 }
  0x24   : > { %v1105_v9 = vld [vmem:[%s339_s29 + $0x4] ss:$12 sps:$4 sm:$0xff] (!%p331_p8)   ;;  %v1107_v10 = vld [vmem:[%s339_s29] ss:$12 sps:$4 sm:$0xff] (!%p331_p8)   ;;  %v1108_v11 = vld [vmem:[%s339_s29 + $0x8] ss:$12 sps:$4 sm:$0xff] (!%p331_p8)  }
  0x25   : > { %480 = vrot.lane.b32.xlu0 (!%p331_p8), %v1105_v9, %s1153_s7  ;;  %722 = vmatprep.subr.bf16.mxu0 (!%p331_p8), %v1105_v9  ;;  %v1109_v12 = vld [vmem:[%s346_s8] ss:$12 sps:$4 sm:$0xff] (!%p331_p8)   ;;  %s1158_s12 = smov (!%p331_p8), 92   ;;  %s1159_s13 = smov (!%p331_p8), 91  }
  0x26   : > { %478 = vrot.lane.b32.xlu1 (!%p331_p8), %v1107_v10, %s1153_s7  ;;  %723 = vmatpush1.bf16.msra.mxu0 (!%p331_p8), %v1107_v10  ;;  %s1160_s16 = smov (!%p331_p8), 90   ;;  %p401_p9 = scmp.lt.s32.totalorder (!%p331_p8), %s1142_s23, 1 }
  0x27   : > { %764 = vmatpush1.bf16.msra.mxu1 %v1108_v11 }
  0x28   : > { %765 = vmatprep.subr.bf16.mxu1 %v1152_v8  ;;  %s1322_s23 = smov (!%p401_p9, %s1142_s23), 1 }
  0x29   : > { %482 = vrot.lane.b32.xlu0 %v1108_v11, %s1153_s7  ;;  %s1054_s19 = smul.u32 24, %s1322_s23  ;;  %s1037_s8 = sshll.u32 %s1322_s23, 3 }
  0x2a   : > { %484 = vrot.lane.b32.xlu1 %v1109_v12, %s1153_s7 }
  0x2b   : > { %s408_s7 = scalar_lea.vmem %s1312_s5, %s1054_s19 }
  0x2d   : > { %506 = vrot.lane.b32.xlu0 %v1105_v9, %s1154_s21 }
  0x2e   : > { %508 = vrot.lane.b32.xlu1 %v1108_v11, %s1154_s21 }
  0x31   : > { %504 = vrot.lane.b32.xlu0 %v1107_v10, %s1154_s21 }
  0x32   : > { %510 = vrot.lane.b32.xlu1 %v1109_v12, %s1154_s21 }
  0x35   : > { %532 = vrot.lane.b32.xlu0 %v1105_v9, %s1155_s9 }
  0x36   : > { %534 = vrot.lane.b32.xlu1 %v1108_v11, %s1155_s9 }
  0x39   : > { %530 = vrot.lane.b32.xlu0 %v1107_v10, %s1155_s9 }
  0x3a   : > { %536 = vrot.lane.b32.xlu1 %v1109_v12, %s1155_s9 }
  0x3d   : > { %558 = vrot.lane.b32.xlu0 %v1105_v9, %s1156_s10 }
  0x3e   : > { %560 = vrot.lane.b32.xlu1 %v1108_v11, %s1156_s10 }
  0x41   : > { %556 = vrot.lane.b32.xlu0 %v1107_v10, %s1156_s10 }
  0x42   : > { %562 = vrot.lane.b32.xlu1 %v1109_v12, %s1156_s10  ;;  %s416_s10 = scalar_lea.vmem %s1313_s6, %s1037_s8 }
  0x45   : > { %584 = vrot.lane.b32.xlu0 %v1105_v9, %s1157_s11 }
  0x46   : > { %586 = vrot.lane.b32.xlu1 %v1108_v11, %s1157_s11 }
  0x49   : > { %582 = vrot.lane.b32.xlu0 %v1107_v10, %s1157_s11 }
  0x4a   : > { %588 = vrot.lane.b32.xlu1 %v1109_v12, %s1157_s11 }
  0x4d   : > { %610 = vrot.lane.b32.xlu0 %v1105_v9, %s1158_s12 }
  0x4e   : > { %612 = vrot.lane.b32.xlu1 %v1108_v11, %s1158_s12 }
  0x51   : > { %608 = vrot.lane.b32.xlu0 %v1107_v10, %s1158_s12 }
  0x52   : > { %614 = vrot.lane.b32.xlu1 %v1109_v12, %s1158_s12 }
  0x55   : > { %636 = vrot.lane.b32.xlu0 %v1105_v9, %s1159_s13 }
  0x56   : > { %638 = vrot.lane.b32.xlu1 %v1108_v11, %s1159_s13 }
  0x59   : > { %634 = vrot.lane.b32.xlu0 %v1107_v10, %s1159_s13 }
  0x5a   : > { %640 = vrot.lane.b32.xlu1 %v1109_v12, %s1159_s13 }
  0x5d   : > { %662 = vrot.lane.b32.xlu0 %v1105_v9, %s1160_s16 }
  0x5e   : > { %664 = vrot.lane.b32.xlu1 %v1108_v11, %s1160_s16 }
  0x61   : > { %660 = vrot.lane.b32.xlu0 %v1107_v10, %s1160_s16  ;;  %v811_v10 = vlaneseq }
  0x62   : > { %666 = vrot.lane.b32.xlu1 %v1109_v12, %s1160_s16  ;;  %v809_v12 = vld [vmem:[%s1311_s4] sm:$0x7] }
  0x63   : > { %v812_v11 = vshrl.u32 %v811_v10, 7 }
  0x65   : > { %709 = vperm.xlu0 %1104, %v706_v15   ;;  %v817_v14 = vsub.s32 1, %v812_v11  ;;  %v821_v15 = vsub.s32 2, %v812_v11 }
  0x97   : > { %v481_v16 = vpop.permute.xlu0 %480 }
  0x98   : > { %v479_v17 = vpop.permute.xlu1 %478 }
  0x99   : > { %v487_v22 = vsel %vm486_vm1, %v479_v17, %v481_v16 }
  0x9b   : > { %v483_v18 = vpop.permute.xlu0 %482 }
  0x9c   : > { %v485_v19 = vpop.permute.xlu1 %484  ;;  %v488_v20 = vsel %vm486_vm1, %v481_v16, %v483_v18 }
  0x9d   : > { %724 = vmatprep.subr.bf16.mxu0 %v488_v20  ;;  %v489_v21 = vsel %vm486_vm1, %v483_v18, %v485_v19  ;;  %v818_v18 = vrot.slane %v809_v12, %v817_v14  ;;  %v822_v19 = vrot.slane %v809_v12, %v821_v15 }
  0x9e   : > { %766 = vmatpush1.bf16.msra.mxu1 %v489_v21  ;;  %725 = vmatpush1.bf16.msra.mxu0 %v487_v22 }
  0x9f   : > { %v507_v23 = vpop.permute.xlu0 %506  ;;  %767 = vmatprep.subr.bf16.mxu1 %v1152_v8 }
  0xa0   : > { %v509_v24 = vpop.permute.xlu1 %508 }
  0xa1   : > { %v514_v25 = vsel %vm512_vm2, %v507_v23, %v509_v24 }
  0xa2   : > { %726 = vmatprep.subr.bf16.mxu0 %v514_v25 }
  0xa3   : > { %v505_v26 = vpop.permute.xlu0 %504 }
  0xa4   : > { %v511_v27 = vpop.permute.xlu1 %510  ;;  %v513_v28 = vsel %vm512_vm2, %v505_v26, %v507_v23 }
  0xa5   : > { %727 = vmatpush1.bf16.msra.mxu0 %v513_v28  ;;  %v515_v29 = vsel %vm512_vm2, %v509_v24, %v511_v27 }
  0xa6   : > { %768 = vmatpush1.bf16.msra.mxu1 %v515_v29 }
  0xa7   : > { %v533_v30 = vpop.permute.xlu0 %532  ;;  %769 = vmatprep.subr.bf16.mxu1 %v1152_v8 }
  0xa8   : > { %v535_v31 = vpop.permute.xlu1 %534 }
  0xa9   : > { %v540_v32 = vsel %vm538_vm3, %v533_v30, %v535_v31 }
  0xaa   : > { %728 = vmatprep.subr.bf16.mxu0 %v540_v32 }
  0xab   : > { %v531_v33 = vpop.permute.xlu0 %530 }
  0xac   : > { %v537_v34 = vpop.permute.xlu1 %536  ;;  %v539_v35 = vsel %vm538_vm3, %v531_v33, %v533_v30 }
  0xad   : > { %729 = vmatpush1.bf16.msra.mxu0 %v539_v35  ;;  %v541_v36 = vsel %vm538_vm3, %v535_v31, %v537_v34 }
  0xae   : > { %770 = vmatpush1.bf16.msra.mxu1 %v541_v36 }
  0xaf   : > { %v559_v37 = vpop.permute.xlu0 %558  ;;  %771 = vmatprep.subr.bf16.mxu1 %v1152_v8 }
  0xb0   : > { %v561_v38 = vpop.permute.xlu1 %560 }
  0xb1   : > { %v566_v39 = vsel %vm564_vm4, %v559_v37, %v561_v38 }
  0xb2   : > { %730 = vmatprep.subr.bf16.mxu0 %v566_v39 }
  0xb3   : > { %v557_v40 = vpop.permute.xlu0 %556 }
  0xb4   : > { %v563_v41 = vpop.permute.xlu1 %562  ;;  %v565_v42 = vsel %vm564_vm4, %v557_v40, %v559_v37 }
  0xb5   : > { %731 = vmatpush1.bf16.msra.mxu0 %v565_v42  ;;  %v567_v43 = vsel %vm564_vm4, %v561_v38, %v563_v41 }
  0xb6   : > { %772 = vmatpush1.bf16.msra.mxu1 %v567_v43 }
  0xb7   : > { %v585_v44 = vpop.permute.xlu0 %584  ;;  %773 = vmatprep.subr.bf16.mxu1 %v1152_v8 }
  0xb8   : > { %v587_v45 = vpop.permute.xlu1 %586 }
  0xb9   : > { %v592_v46 = vsel %vm590_vm5, %v585_v44, %v587_v45 }
  0xba   : > { %732 = vmatprep.subr.bf16.mxu0 %v592_v46 }
  0xbb   : > { %v583_v47 = vpop.permute.xlu0 %582 }
  0xbc   : > { %v589_v48 = vpop.permute.xlu1 %588  ;;  %v591_v49 = vsel %vm590_vm5, %v583_v47, %v585_v44 }
  0xbd   : > { %733 = vmatpush1.bf16.msra.mxu0 %v591_v49  ;;  %v593_v50 = vsel %vm590_vm5, %v587_v45, %v589_v48 }
  0xbe   : > { %774 = vmatpush1.bf16.msra.mxu1 %v593_v50 }
  0xbf   : > { %v611_v51 = vpop.permute.xlu0 %610  ;;  %775 = vmatprep.subr.bf16.mxu1 %v1152_v8 }
  0xc0   : > { %v613_v52 = vpop.permute.xlu1 %612 }
  0xc1   : > { %v618_v53 = vsel %vm616_vm6, %v611_v51, %v613_v52 }
  0xc2   : > { %734 = vmatprep.subr.bf16.mxu0 %v618_v53 }
  0xc3   : > { %v609_v54 = vpop.permute.xlu0 %608 }
  0xc4   : > { %v615_v55 = vpop.permute.xlu1 %614  ;;  %v617_v56 = vsel %vm616_vm6, %v609_v54, %v611_v51 }
  0xc5   : > { %735 = vmatpush1.bf16.msra.mxu0 %v617_v56  ;;  %v619_v57 = vsel %vm616_vm6, %v613_v52, %v615_v55 }
  0xc6   : > { %776 = vmatpush1.bf16.msra.mxu1 %v619_v57 }
  0xc7   : > { %v637_v58 = vpop.permute.xlu0 %636  ;;  %777 = vmatprep.subr.bf16.mxu1 %v1152_v8 }
  0xc8   : > { %v639_v59 = vpop.permute.xlu1 %638 }
  0xc9   : > { %v644_v60 = vsel %vm642_vm7, %v637_v58, %v639_v59 }
  0xca   : > { %736 = vmatprep.subr.bf16.mxu0 %v644_v60 }
  0xcb   : > { %v635_v61 = vpop.permute.xlu0 %634 }
  0xcc   : > { %v641_v62 = vpop.permute.xlu1 %640  ;;  %v643_v63 = vsel %vm642_vm7, %v635_v61, %v637_v58 }
  0xcd   : > { %737 = vmatpush1.bf16.msra.mxu0 %v643_v63  ;;  %v645_v0 = vsel %vm642_vm7, %v639_v59, %v641_v62 }
  0xce   : > { %778 = vmatpush1.bf16.msra.mxu1 %v645_v0 }
  0xcf   : > { %v663_v1 = vpop.permute.xlu0 %662  ;;  %779 = vmatprep.subr.bf16.mxu1 %v1152_v8  ;;  %v813_v8 = vsub.s32 0, %v812_v11 }
  0xd0   : > { %v665_v2 = vpop.permute.xlu1 %664 }
  0xd1   : > { %v670_v3 = vsel %vm668_vm8, %v663_v1, %v665_v2  ;;  %v814_v16 = vrot.slane %v809_v12, %v813_v8 }
  0xd2   : > { %738 = vmatprep.subr.bf16.mxu0 %v670_v3 }
  0xd3   : > { %v661_v4 = vpop.permute.xlu0 %660 }
  0xd4   : > { %v667_v5 = vpop.permute.xlu1 %666  ;;  %v669_v6 = vsel %vm668_vm8, %v661_v4, %v663_v1 }
  0xd5   : > { %739 = vmatpush1.bf16.msra.mxu0 %v669_v6  ;;  %v671_v9 = vsel %vm668_vm8, %v665_v2, %v667_v5 }
  0xd6   : > { %780 = vmatpush1.bf16.msra.mxu1 %v671_v9 }
  0xd8   : > { %755 = vmatmul.mubr.bf16.vlgmr.msra.gmra.mrb[0].mxu0 %v1044_v7 }
  0xd9   : > { %796 = vmatmul.mubr.bf16.vlgmr.msra.gmra.mrb[0].mxu1 %v1044_v7 }
  0xe4   : > { %v710_v13 = vpop.permute.xlu0 %709 }
 0x1ab   : > { %v756_v17 = vpop.f32.mrb[0].mxu0 }
 0x1ac   : > { %v757_v20 = vadd.f32 %v756_v17, %v710_v13  ;;  %v797_v21 = vpop.f32.mrb[0].mxu1  ;;  %v758_v22 = vpop.f32.mrb[1].mxu0 }
 0x1ad   : > { %v798_v23 = vadd.f32 %v797_v21, %v710_v13  ;;  %v759_v24 = vadd.f32 %v758_v22, %v710_v13  ;;  %v799_v25 = vpop.f32.mrb[1].mxu1  ;;  %v760_v26 = vpop.f32.mrb[2].mxu0 }
 0x1ae   : > { %803 = vst [vmem:[%s408_s7] sm:$0xff] %v757_v20  ;;  %v800_v27 = vpop.f32.mrb[2].mxu1  ;;  %v761_v28 = vpop.f32.mrb[3].mxu0  ;;  %v826_v29 = vmul.f32 %v814_v16, %v757_v20 }
 0x1af   : > { %805 = vst [vmem:[%s408_s7 + $0x10] sm:$0xff] %v798_v23  ;;  %804 = vst [vmem:[%s408_s7 + $0x8] sm:$0xff] %v759_v24  ;;  %v801_v30 = vpop.f32.mrb[3].mxu1  ;;  %v827_v31 = vmul.f32 %v818_v18, %v759_v24  ;;  %v828_v32 = vmul.f32 %v822_v19, %v798_v23 }
 0x1b0   : > { %v835_v33 = vmul.f32 %v826_v29, %v757_v20 }
 0x1b1   : > { %v829_v34 = vadd.f32 %v827_v31, %v826_v29  ;;  %v836_v35 = vmul.f32 %v827_v31, %v759_v24  ;;  %v837_v37 = vmul.f32 %v828_v32, %v798_v23 }
 0x1b3   : > { %v830_v36 = vadd.f32 %v829_v34, %v828_v32  ;;  %v838_v38 = vadd.f32 %v836_v35, %v835_v33 }
 0x1b5   : > { %831 = vadd.xlane.f32.xlu1 %v830_v36  ;;  %v839_v39 = vadd.f32 %v838_v38, %v837_v37 }
 0x1b7   : > { %840 = vadd.xlane.f32.xlu0 %v839_v39 }
 0x242   : > { %v832_v40 = vpop.xlane.xlu1 %831 }
 0x243   : > { %834 = vst.msk [vmem:[%s416_s10] sm:$0xff] %vm833_vm9, %v832_v40 }
 0x244   : > { %v841_v41 = vpop.xlane.xlu0 %840 }
 0x245   : > { %843 = vst.msk [vmem:[%s416_s10] sm:$0xff] %vm842_vm10, %v841_v41 }
 0x246 PF: > { %s17_s25 = sadd.s32 1, %s1150_s25   ;;  %s1315_s21 = smov %s1138_s22 }
 0x247   : > { %p14_p10 = scmp.ge.s32.totalorder %s17_s25, 4   ;;  %s1316_s22 = smov %s1235_s30 }
 0x248   : > { %s1317_s23 = smov %s1146_s24  ;;  %s1318_s24 = smov %s1320_s26 }
 0x249   :  { %16 = sbr.rel (!%p14_p10) target bundleno = 3 (0x3), region = 162 }

</bundles_post_ra>
